<compile_context>
chip_gen: v7x
topology: tpu7x:2x2x1
jax: 0.10.0
libtpu: 0.0.40
codegen_flags: <defaults>
</compile_context>

<pallas_src>
import functools

import jax
import jax.numpy as jnp
from jax.experimental import pallas as pl
from jax.experimental.pallas import tpu as pltpu

LANES = 128
SUBLANES = 8
# ~2 MiB of native-dtype DMA per input block, keyed by itemsize.
_TILE_ROWS_BY_ITEMSIZE = {4: 4096, 2: 8192, 1: 16384}


def _mape_sum_kernel(t_ref, p_ref, acc_ref, *, eps, rows_valid, needs_mask):
    """Accumulate abs((t - p) / (t + eps)) into a resident (1, 8, 128) output
    block (per-core partial sums).  Grid = (core, inner-tile)."""
    inner = pl.program_id(1)

    @pl.when(inner == 0)
    def _():
        acc_ref[...] = jnp.zeros_like(acc_ref)

    t = t_ref[...].astype(jnp.float32)
    p = p_ref[...].astype(jnp.float32)
    val = jnp.abs((t - p) / (t + jnp.float32(eps)))

    if needs_mask:
        # Mask rows past the end of the real data (partial last tile and any
        # overflow tile slots assigned to a core beyond the real tile count).
        tile_rows = t_ref.shape[0]
        tile_idx = pl.program_id(0) * pl.num_programs(1) + inner
        row0 = tile_idx * tile_rows
        row_ids = jax.lax.broadcasted_iota(jnp.int32, val.shape, 0) + row0
        val = jnp.where(row_ids < rows_valid, val, jnp.float32(0.0))

    # (tile_rows, 128) -> (tile_rows//8, 8, 128) is vreg-layout compatible;
    # axis-0 sum is pure aligned VALU adds (no XLU).
    acc_ref[0] += val.reshape(-1, SUBLANES, LANES).sum(axis=0)


def mape(target, pred, eps=1e-12):
    assert target.shape == pred.shape
    n_elems = target.size

    t_flat = jnp.ravel(target)
    p_flat = jnp.ravel(pred)

    rows_valid = n_elems // LANES          # rows of the 128-lane-aligned prefix
    n_main = rows_valid * LANES
    tail = n_elems - n_main                # < 128 leftover elements

    total = jnp.float32(0.0)

    if rows_valid > 0:
        itemsize = jnp.dtype(target.dtype).itemsize
        cap = _TILE_ROWS_BY_ITEMSIZE.get(itemsize, 4096)
        rows_rounded = pl.cdiv(rows_valid, SUBLANES) * SUBLANES
        tile_rows = min(cap, rows_rounded)                 # multiple of 8
        num_tiles = pl.cdiv(rows_valid, tile_rows)
        num_cores = 2 if num_tiles >= 2 else 1             # megacore split (v7x)
        tiles_per_core = pl.cdiv(num_tiles, num_cores)
        overflow = num_cores * tiles_per_core != num_tiles
        needs_mask = (rows_valid % tile_rows != 0) or overflow

        if tail > 0:
            # Rare path: only the 128-aligned prefix is fed to the kernel.
            t_main = t_flat[:n_main]
            p_main = p_flat[:n_main]
        else:
            t_main, p_main = t_flat, p_flat

        t2d = t_main.reshape(rows_valid, LANES)
        p2d = p_main.reshape(rows_valid, LANES)

        if overflow:
            def in_map(c, i, _last=num_tiles - 1, _tpc=tiles_per_core):
                # Clamp so DMA source blocks always start in-bounds; masked rows
                # contribute zero for duplicated/overflow slots.
                return (jnp.minimum(c * _tpc + i, _last), 0)
        else:
            def in_map(c, i, _tpc=tiles_per_core):
                return (c * _tpc + i, 0)

        partials = pl.pallas_call(
            functools.partial(
                _mape_sum_kernel,
                eps=eps,
                rows_valid=rows_valid,
                needs_mask=needs_mask,
            ),
            out_shape=jax.ShapeDtypeStruct(
                (num_cores, SUBLANES, LANES), jnp.float32),
            grid_spec=pltpu.PrefetchScalarGridSpec(
                num_scalar_prefetch=0,
                grid=(num_cores, tiles_per_core),
                in_specs=[
                    pl.BlockSpec((tile_rows, LANES), in_map),
                    pl.BlockSpec((tile_rows, LANES), in_map),
                ],
                # Same block index across the inner axis -> resident accumulator.
                out_specs=pl.BlockSpec(
                    (1, SUBLANES, LANES), lambda c, i: (c, 0, 0)),
            ),
            compiler_params=pltpu.CompilerParams(
                dimension_semantics=("parallel", "arbitrary"),
                vmem_limit_bytes=32 * 1024 * 1024,
            ),
        )(t2d, p2d)

        total = total + jnp.sum(partials)

    if tail > 0:
        # <128 leftover elements: tiny plain-JAX sum, no padding/copy of the bulk.
        t_tail = t_flat[n_main:].astype(jnp.float32)
        p_tail = p_flat[n_main:].astype(jnp.float32)
        total = total + jnp.sum(jnp.abs((t_tail - p_tail) /
                                        (t_tail + jnp.float32(eps))))

    # mean = sum / N (scalar glue in plain JAX)
    return (total / jnp.float32(n_elems)).astype(jnp.float32)


if __name__ == "__main__":
    key = jax.random.PRNGKey(0)
    k_t, k_p = jax.random.split(key)

    shape = (2, 4, 16, 16)  # NCHW-style example input
    target = jax.random.normal(k_t, shape, dtype=jnp.float32) + 2.0
    pred = target + 0.1 * jax.random.normal(k_p, shape, dtype=jnp.float32)

    out = mape(target, pred)
    jax.block_until_ready(out)

    # quick reference check against plain JAX
    ref = jnp.mean(jnp.abs((target - pred) / (target + 1e-12)))
    assert jnp.allclose(out, ref, rtol=1e-5, atol=1e-6), (out, ref)

    print("KERNEL_OK")
</pallas_src>

<mosaic_0001>
module attributes {stable_mosaic.version = 11 : i64} {
  func.func @_mape_sum_kernel(%arg0: i32, %arg1: i32, %arg2: memref<16x128xf32, #tpu.memory_space<vmem>>, %arg3: memref<16x128xf32, #tpu.memory_space<vmem>>, %arg4: memref<1x8x128xf32, #tpu.memory_space<vmem>>) attributes {dimension_semantics = [#tpu.dimension_semantics<parallel>, #tpu.dimension_semantics<arbitrary>], iteration_bounds = array<i64: 1, 1>, scalar_prefetch = 0 : i64, scratch_operands = 0 : i64, tpu.core_type = #tpu.core_type<tc>, window_params = [{transform_indices = @transform_0, window_bounds = array<i64: 16, 128>}, {transform_indices = @transform_1, window_bounds = array<i64: 16, 128>}, {transform_indices = @transform_2, window_bounds = array<i64: 1, 8, 128>}]} {
    %c0_i32 = arith.constant 0 : i32
    %0 = arith.cmpi eq, %arg1, %c0_i32 : i32
    %1 = arith.extui %0 : i1 to i32
    %c0_i32_0 = arith.constant 0 : i32
    %2 = arith.cmpi ne, %1, %c0_i32_0 : i32
    scf.if %2 {
      %cst_11 = arith.constant 0.000000e+00 : f32
      %18 = vector.broadcast %cst_11 : f32 to vector<1x8x128xf32>
      %c0_12 = arith.constant 0 : index
      %c0_13 = arith.constant 0 : index
      %c0_14 = arith.constant 0 : index
      %19 = vector.load %arg4[%c0_12, %c0_13, %c0_14] : memref<1x8x128xf32, #tpu.memory_space<vmem>>, vector<1x8x128xf32>
      tpu.vector_store %arg4[%c0_12, %c0_13, %c0_14], %18 {strides = array<i32>} : memref<1x8x128xf32, #tpu.memory_space<vmem>>, vector<1x8x128xf32>,
    } else {
    }
    %c0 = arith.constant 0 : index
    %c0_1 = arith.constant 0 : index
    %3 = vector.load %arg2[%c0, %c0_1] : memref<16x128xf32, #tpu.memory_space<vmem>>, vector<16x128xf32>
    %c0_2 = arith.constant 0 : index
    %c0_3 = arith.constant 0 : index
    %4 = vector.load %arg3[%c0_2, %c0_3] : memref<16x128xf32, #tpu.memory_space<vmem>>, vector<16x128xf32>
    %5 = arith.subf %3, %4 : vector<16x128xf32>
    %cst = arith.constant 9.99999996E-13 : f32
    %6 = vector.broadcast %cst : f32 to vector<16x128xf32>
    %7 = arith.addf %3, %6 : vector<16x128xf32>
    %8 = arith.divf %5, %7 : vector<16x128xf32>
    %9 = math.absf %8 : vector<16x128xf32>
    %c0_4 = arith.constant 0 : index
    %c0_5 = arith.constant 0 : index
    %c0_6 = arith.constant 0 : index
    %10 = vector.load %arg4[%c0_4, %c0_5, %c0_6] : memref<1x8x128xf32, #tpu.memory_space<vmem>>, vector<1x8x128xf32>
    %11 = vector.shape_cast %10 : vector<1x8x128xf32> to vector<8x128xf32>
    %12 = vector.shape_cast %9 : vector<16x128xf32> to vector<2x8x128xf32>
    %cst_7 = arith.constant dense<0.000000e+00> : vector<8x128xf32>
    %13 = vector.multi_reduction <add>, %12, %cst_7 [0] : vector<2x8x128xf32> to vector<8x128xf32>
    %14 = arith.addf %11, %13 : vector<8x128xf32>
    %c0_8 = arith.constant 0 : index
    %c0_9 = arith.constant 0 : index
    %c0_10 = arith.constant 0 : index
    %15 = vector.load %arg4[%c0_8, %c0_9, %c0_10] : memref<1x8x128xf32, #tpu.memory_space<vmem>>, vector<1x8x128xf32>
    %16 = vector.shape_cast %15 : vector<1x8x128xf32> to vector<8x128xf32>
    %17 = vector.shape_cast %14 : vector<8x128xf32> to vector<1x8x128xf32>
    tpu.vector_store %arg4[%c0_8, %c0_9, %c0_10], %17 {strides = array<i32>} : memref<1x8x128xf32, #tpu.memory_space<vmem>>, vector<1x8x128xf32>,
    return
  }
  func.func @transform_0(%arg0: i32, %arg1: i32) -> (i32, i32) {
    %c1_i32 = arith.constant 1 : i32
    %0 = arith.muli %arg0, %c1_i32 : i32
    %1 = arith.addi %0, %arg1 : i32
    %c0_i32 = arith.constant 0 : i32
    %c0_i32_0 = arith.constant 0 : i32
    return %1, %c0_i32 : i32, i32
  }
  func.func @transform_1(%arg0: i32, %arg1: i32) -> (i32, i32) {
    %c1_i32 = arith.constant 1 : i32
    %0 = arith.muli %arg0, %c1_i32 : i32
    %1 = arith.addi %0, %arg1 : i32
    %c0_i32 = arith.constant 0 : i32
    %c0_i32_0 = arith.constant 0 : i32
    return %1, %c0_i32 : i32, i32
  }
  func.func @transform_2(%arg0: i32, %arg1: i32) -> (i32, i32, i32) {
    %c0_i32 = arith.constant 0 : i32
    %c0_i32_0 = arith.constant 0 : i32
    %c0_i32_1 = arith.constant 0 : i32
    return %arg0, %c0_i32, %c0_i32_0 : i32, i32, i32
  }
}

</mosaic_0001>

<bundles_post_ra>
// kernel: tpu_custom_call.1
= control target key start
LH: loop header
LB: loop body
LE: loop exit
PB: predicated region body
PF: predicated region fallthrough
CT: control target
= control target key end

     0   :  { %7 = vsyncpa [#allocation3], 0  ;;  %s229_s0 = inlined_call_operand.hbm [shape: f32[16,128], index: 0, kind: input, shape index: {}]   ;;  %s230_s1 = inlined_call_operand.hbm [shape: f32[16,128], index: 1, kind: input, shape index: {}]   ;;  %s231_s2 = inlined_call_operand.hbm [shape: f32[1,8,128], index: 2, kind: output, shape index: {}]  }
   0x1   :  { %8 = vsyncpa [#allocation6], 0 }
   0x2   :  { %9 = vsyncpa [#allocation4], 0  ;;  %s173_s9 = smov [#allocation2]   ;;  %s101_s13 = scalar_lea.hbm %s229_s0, 256 }
   0x3   :  { %s19_s10 = sshll.u32 %s173_s9, 4  ;;  %p102_p0 = scmp.ne.s32.totalorder %s229_s0, %s101_s13  ;;  %s20_s10 = int_to_ptr.vmem [resolvable:$true] %s19_s10 }
   0x4   :  { %p105_p1 = scmp.lt.u32.totalorder %s101_s13, %s229_s0 }
   0x6   :  { %p107_p2 = pnand %p105_p1, %p102_p0 }
   0x8   :  { %110 = shalt.err (!%p107_p2)
}
   0x9   :  { %s111_s18 = scalar_lea.vmem %s20_s10, 256  ;;  %p116_p4 = scmp.lt.s32.totalorder %s20_s10, %s20_s10 }
   0xa   :  { %p112_p3 = scmp.ne.s32.totalorder %s20_s10, %s111_s18  ;;  %p117_p5 = scmp.lt.s32.totalorder %s111_s18, %s111_s18 }
   0xc   :  { %p118_p6 = por %p117_p5, %p116_p4 }
   0xe   :  { %p119_p7 = pnand %p118_p6, %p112_p3 }
  0x10   :  { %122 = shalt.err (!%p119_p7)
}
  0x11   :  { %s174_s19 = smov 128   ;;  %s175_s20 = smov 8  }
  0x12   :  { %25 = dma.hbm_to_vmem [thread:$0]  %s229_s0, 256, %s20_s10, [#allocation3], %s174_s19, %s174_s19, %s175_s20  }
  0x13   :  { %s176_s23 = smov [#allocation5]   ;;  %s123_s27 = scalar_lea.hbm %s230_s1, 256 }
  0x14   :  { %s35_s24 = sshll.u32 %s176_s23, 4  ;;  %p124_p8 = scmp.ne.s32.totalorder %s230_s1, %s123_s27  ;;  %s36_s24 = int_to_ptr.vmem [resolvable:$true] %s35_s24 }
  0x15   :  { %p127_p9 = scmp.lt.u32.totalorder %s123_s27, %s230_s1 }
  0x17   :  { %p129_p10 = pnand %p127_p9, %p124_p8 }
  0x19   :  { %132 = shalt.err (!%p129_p10)
}
  0x1a   :  { %s133_s4 = scalar_lea.vmem %s36_s24, 256  ;;  %p138_p12 = scmp.lt.s32.totalorder %s36_s24, %s36_s24 }
  0x1b   :  { %p134_p11 = scmp.ne.s32.totalorder %s36_s24, %s133_s4  ;;  %p139_p13 = scmp.lt.s32.totalorder %s133_s4, %s133_s4 }
  0x1d   :  { %p140_p0 = por %p139_p13, %p138_p12 }
  0x1f   :  { %p141_p1 = pnand %p140_p0, %p134_p11 }
  0x21   :  { %144 = shalt.err (!%p141_p1)
}
  0x22   :  { %41 = dma.hbm_to_vmem [thread:$0]  %s230_s1, 256, %s36_s24, [#allocation6], %s174_s19, %s174_s19, %s175_s20  }
  0x23   :  { %167 = dma.done.wait [#allocation3], 256  }
  0x24   :  { %168 = vsyncadd [#allocation3], 4294967040 }
  0x25   :  { %169 = dma.done.wait [#allocation6], 256  }
  0x26   :  { %170 = vsyncadd [#allocation6], 4294967040  ;;  %v57_v0 = vld [vmem:[#allocation2] sm:$0xff]  ;;  %v58_v1 = vld [vmem:[#allocation2 + $0x8] sm:$0xff]  ;;  %s177_s1 = smov [#allocation7]  }
  0x27   :  { %v63_v2 = vadd.f32 1e-12, %v57_v0  ;;  %v64_v3 = vadd.f32 1e-12, %v58_v1  ;;  %v59_v4 = vld [vmem:[#allocation5] sm:$0xff]  ;;  %v60_v5 = vld [vmem:[#allocation5 + $0x8] sm:$0xff] }
  0x28   :  { %v61_v6 = vsub.f32 %v57_v0, %v59_v4  ;;  %v62_v7 = vsub.f32 %v58_v1, %v60_v5  ;;  %s81_s6 = sshll.u32 %s177_s1, 4  ;;  %s82_s6 = int_to_ptr.vmem [resolvable:$true] %s81_s6 }
  0x29   :  { %97 = vrcp.f32 %v63_v2  ;;  %s145_s7 = scalar_lea.vmem %s82_s6, 128  ;;  %p150_p3 = scmp.lt.s32.totalorder %s82_s6, %s82_s6 }
  0x2a   :  { %99 = vrcp.f32 %v64_v3  ;;  %p146_p2 = scmp.ne.s32.totalorder %s82_s6, %s145_s7  ;;  %p151_p4 = scmp.lt.s32.totalorder %s145_s7, %s145_s7 }
  0x2c   :  { %p152_p5 = por %p151_p4, %p150_p3 }
  0x2e   :  { %p153_p6 = pnand %p152_p5, %p146_p2 }
  0x33   :  { %v98_v8 = vpop.eup %97 }
  0x34   :  { %v100_v9 = vpop.eup %99  ;;  %v66_v10 = vmul.f32 %v98_v8, %v61_v6 }
  0x35   :  { %v68_v11 = vmul.f32 %v100_v9, %v62_v7 }
  0x36   :  { %v69_v12 = vand.u32 2147483647, %v66_v10 }
  0x37   :  { %v70_v13 = vand.u32 2147483647, %v68_v11 }
  0x39   :  { %v72_v14 = vadd.f32 %v70_v13, %v69_v12 }
  0x3b   :  { %74 = vst [vmem:[#allocation7] sm:$0xff] %v72_v14 }
  0x3c   :  { %156 = shalt.err (!%p153_p6)
}
  0x3d   :  { %s157_s10 = scalar_lea.hbm %s231_s2, 128 }
  0x3e   :  { %p158_p7 = scmp.ne.s32.totalorder %s231_s2, %s157_s10  ;;  %p161_p8 = scmp.lt.u32.totalorder %s157_s10, %s231_s2 }
  0x40   :  { %p163_p9 = pnand %p161_p8, %p158_p7 }
  0x42   :  { %166 = shalt.err (!%p163_p9)
}
  0x43   :  { %84 = dma.vmem_to_hbm [thread:$0]  %s82_s6, 128, %s231_s2, [#allocation4]  }
  0x44   :  { %171 = dma.done.wait [#allocation4], 128  }
  0x45   :  { %172 = vsyncadd [#allocation4], 4294967168 }
  0x46   :  { %88 = vsyncpa [#allocation3], 1 }
  0x47   :  { %89 = vsyncpa [#allocation6], 1 }
  0x48   :  { %90 = vsyncpa [#allocation4], 1 }

</bundles_post_ra>
